<compile_context>
chip_gen: v7x
topology: tpu7x:2x2x1
jax: 0.10.0
libtpu: 0.0.40
codegen_flags: <defaults>
</compile_context>

<pallas_src>
import functools

import jax
import jax.numpy as jnp
import numpy as np
from jax import lax
from jax.experimental import pallas as pl
from jax.experimental.pallas import tpu as pltpu

BN_EPS = 1e-5
LEAKY_SLOPE = 0.2


def conv_stats_kernel(xpf_ref, w_ref, mask_ref, y_ref, stats_ref, *, wp, m_wide, kh, kw):
    """Pass 1: direct conv (shifted-matmul form) + per-channel sum / sum-of-squares.

    xpf_ref:   [1, Cin, Hp*Wp + kw-1]  flattened reflect-padded input (one batch)
    w_ref:     [kh*kw, Cout, Cin]      per-offset weight matrices
    mask_ref:  [1, M_wide]             1.0 on valid output columns, 0.0 on wide garbage
    y_ref:     [1, Cout, M_wide]       pre-BN conv output ("wide" spatial layout)
    stats_ref: [Cout, 2]               col 0 = sum(y), col 1 = sum(y*y) over valid M
    """
    b = pl.program_id(0)

    @pl.when(b == 0)
    def _init():
        stats_ref[...] = jnp.zeros_like(stats_ref)

    # Convolution as kh*kw shifted matmuls.  Every slice start is a Python int,
    # so these are static lane slices of the resident padded image.
    acc = None
    for i in range(kh):
        for j in range(kw):
            off = i * wp + j
            slab = xpf_ref[0, :, off:off + m_wide]                 # [Cin, M_wide]
            part = jnp.dot(w_ref[i * kw + j], slab,
                           preferred_element_type=jnp.float32)     # [Cout, M_wide]
            acc = part if acc is None else acc + part
    y_ref[0] = acc

    # Per-channel statistics over *valid* output positions only (mask out the
    # kw-1 wrap-around columns of the wide layout).  Cross-lane sums -> XLU.
    mask = mask_ref[...]                                           # [1, M_wide]
    ym = acc * mask
    stats_ref[:, 0:1] += jnp.sum(ym, axis=-1, keepdims=True)
    stats_ref[:, 1:2] += jnp.sum(ym * acc, axis=-1, keepdims=True)


def bn_lrelu_kernel(stats_ref, gamma_ref, beta_ref, y_ref, o_ref, *, inv_m, wo):
    """Pass 2: folded BatchNorm (one scale/shift FMA per element) + LeakyReLU(0.2).

    stats_ref: [Cout, 2]            global sum / sum-of-squares from pass 1
    gamma_ref: [Cout, 1], beta_ref: [Cout, 1]
    y_ref:     [1, Cout, th, Wp]    wide conv output row-block
    o_ref:     [1, Cout, th, Wo]    final NCHW output row-block
    """
    mean = stats_ref[:, 0:1] * inv_m                    # [Cout, 1]
    ex2 = stats_ref[:, 1:2] * inv_m
    var = ex2 - mean * mean                             # biased (training-mode) var
    scale = gamma_ref[...] * lax.rsqrt(var + BN_EPS)    # [Cout, 1]
    shift = beta_ref[...] - mean * scale

    yv = y_ref[0, :, :, :wo]                            # drop wide-garbage columns
    z = yv * scale[:, :, None] + shift[:, :, None]      # one mul + one add / elem
    o_ref[0] = jnp.where(z >= 0, z, LEAKY_SLOPE * z)


def _row_tile(ho):
    """Largest output-row tile (multiple of 8) dividing Ho, else the full Ho."""
    for t in (128, 64, 32, 16, 8):
        if ho % t == 0:
            return t
    return ho


@functools.partial(jax.jit, static_argnames=("stride", "padding"))
def conv_block_forward(x, weight, bias, gamma, beta, *, stride, padding):
    """x: [N, Cin, H, W] (NCHW); weight: [Cout, Cin, kh, kw] (PyTorch layout)."""
    del bias  # cancelled exactly by training-mode BN mean subtraction
    if stride != 1:
        raise NotImplementedError("all ConvBlocks in SR_v4_x8 use stride=1")

    n, cin, h, w = x.shape
    cout, _, kh, kw = weight.shape
    p = padding

    xp = jnp.pad(x, ((0, 0), (0, 0), (p, p), (p, p)), mode="reflect")
    hp, wp_ = h + 2 * p, w + 2 * p
    ho, wo = hp - kh + 1, wp_ - kw + 1
    m_wide = ho * wp_                      # "wide" flattened spatial extent
    l_in = hp * wp_ + (kw - 1)             # flat input length incl. tail halo

    # Flattened padded input (contiguous reshape, then kw-1 zero tail so every
    # shifted slice stays in-bounds).  No im2col: input lands in HBM exactly once.
    xpf = jnp.pad(xp.reshape(n, cin, hp * wp_), ((0, 0), (0, 0), (0, kw - 1)))

    # Weight as kh*kw independent [Cout, Cin] matrices, offset-major.
    w_r = jnp.transpose(weight, (2, 3, 0, 1)).reshape(kh * kw, cout, cin)
    w_r = w_r.astype(jnp.float32)
    g2d = gamma.reshape(cout, 1).astype(jnp.float32)
    b2d = beta.reshape(cout, 1).astype(jnp.float32)

    # 1.0 on the Wo valid columns of each wide row, 0.0 on the kw-1 garbage ones.
    colmask = jnp.broadcast_to(jnp.arange(wp_) < wo, (ho, wp_))
    colmask = colmask.reshape(1, m_wide).astype(jnp.float32)

    # ---- Pass 1: conv via shifted MXU matmuls + global per-channel stats ----
    y, stats = pl.pallas_call(
        functools.partial(conv_stats_kernel, wp=wp_, m_wide=m_wide, kh=kh, kw=kw),
        out_shape=(
            jax.ShapeDtypeStruct((n, cout, m_wide), jnp.float32),
            jax.ShapeDtypeStruct((cout, 2), jnp.float32),
        ),
        grid=(n,),
        in_specs=[
            pl.BlockSpec((1, cin, l_in), lambda b: (b, 0, 0)),
            pl.BlockSpec((kh * kw, cout, cin), lambda b: (0, 0, 0)),
            pl.BlockSpec((1, m_wide), lambda b: (0, 0)),
        ],
        out_specs=(
            pl.BlockSpec((1, cout, m_wide), lambda b: (b, 0, 0)),
            pl.BlockSpec((cout, 2), lambda b: (0, 0)),
        ),
        compiler_params=pltpu.CompilerParams(
            dimension_semantics=("arbitrary",)),
    )(xpf, w_r, colmask)

    # Free reinterpretation of the wide output as [N, Cout, Ho, Wp] (contiguous).
    y4 = y.reshape(n, cout, ho, wp_)

    # ---- Pass 2: folded BN + LeakyReLU, parallel over (batch, row tiles) ----
    th = _row_tile(ho)
    out = pl.pallas_call(
        functools.partial(bn_lrelu_kernel, inv_m=1.0 / float(n * ho * wo), wo=wo),
        out_shape=jax.ShapeDtypeStruct((n, cout, ho, wo), jnp.float32),
        grid=(n, ho // th),
        in_specs=[
            pl.BlockSpec((cout, 2), lambda b, ri: (0, 0)),
            pl.BlockSpec((cout, 1), lambda b, ri: (0, 0)),
            pl.BlockSpec((cout, 1), lambda b, ri: (0, 0)),
            pl.BlockSpec((1, cout, th, wp_), lambda b, ri: (b, 0, ri, 0)),
        ],
        out_specs=pl.BlockSpec((1, cout, th, wo), lambda b, ri: (b, 0, ri, 0)),
        compiler_params=pltpu.CompilerParams(
            dimension_semantics=("parallel", "parallel")),
    )(stats, g2d, b2d, y4)

    return out


def _reference(x, weight, bias, gamma, beta, *, stride, padding):
    """Pure-JAX reference mirroring the PyTorch ConvBlock forward (training BN)."""
    xp = jnp.pad(
        x, ((0, 0), (0, 0), (padding, padding), (padding, padding)), mode="reflect"
    )
    y = lax.conv_general_dilated(
        xp, weight, window_strides=(stride, stride), padding="VALID",
        dimension_numbers=("NCHW", "OIHW", "NCHW"),
    ) + bias.reshape(1, -1, 1, 1)
    mean = jnp.mean(y, axis=(0, 2, 3), keepdims=True)
    var = jnp.mean((y - mean) ** 2, axis=(0, 2, 3), keepdims=True)
    z = gamma.reshape(1, -1, 1, 1) * (y - mean) * lax.rsqrt(var + BN_EPS) \
        + beta.reshape(1, -1, 1, 1)
    return jnp.where(z >= 0, z, LEAKY_SLOPE * z)


def _run_case(key, n, cin, cout, h, w, k, pad):
    kx, kw_, kb = jax.random.split(key, 3)
    x = jax.random.normal(kx, (n, cin, h, w), dtype=jnp.float32)
    weight = jax.random.normal(kw_, (cout, cin, k, k), dtype=jnp.float32) * 0.1
    bias = jax.random.normal(kb, (cout,), dtype=jnp.float32) * 0.1
    gamma = jnp.ones((cout,), dtype=jnp.float32)   # BatchNorm2d default weight
    beta = jnp.zeros((cout,), dtype=jnp.float32)   # BatchNorm2d default bias

    out = conv_block_forward(x, weight, bias, gamma, beta, stride=1, padding=pad)
    out = jax.block_until_ready(out)
    ref = _reference(x, weight, bias, gamma, beta, stride=1, padding=pad)
    ref = jax.block_until_ready(ref)

    assert out.shape == (n, cout, h, w), out.shape
    np.testing.assert_allclose(np.asarray(out), np.asarray(ref), atol=1e-4, rtol=1e-4)


if __name__ == "__main__":
    root = jax.random.PRNGKey(0)
    k1, k2, k3 = jax.random.split(root, 3)

    # 3x3 ConvBlock (like e1..end blocks), small shapes.
    _run_case(k1, n=2, cin=4, cout=8, h=16, w=16, k=3, pad=1)
    # 5x5 ConvBlock (like p0_* / decode blocks), exercises the larger halo.
    _run_case(k2, n=2, cin=8, cout=8, h=16, w=16, k=5, pad=2)
    # Non-square spatial extent to exercise Ho != Wp bookkeeping.
    _run_case(k3, n=1, cin=4, cout=16, h=8, w=24, k=3, pad=1)

    print("KERNEL_OK")
</pallas_src>

<mosaic_0001>
module attributes {stable_mosaic.version = 11 : i64} {
  func.func @bn_lrelu_kernel(%arg0: i32, %arg1: i32, %arg2: memref<8x2xf32, #tpu.memory_space<vmem>>, %arg3: memref<8x1xf32, #tpu.memory_space<vmem>>, %arg4: memref<8x1xf32, #tpu.memory_space<vmem>>, %arg5: memref<1x8x16x18xf32, #tpu.memory_space<vmem>>, %arg6: memref<1x8x16x16xf32, #tpu.memory_space<vmem>>) attributes {dimension_semantics = [#tpu.dimension_semantics<parallel>, #tpu.dimension_semantics<parallel>], iteration_bounds = array<i64: 2, 1>, scalar_prefetch = 0 : i64, scratch_operands = 0 : i64, tpu.core_type = #tpu.core_type<tc>, window_params = [{pipeline_mode = #tpu.pipeline_mode<synchronous>, transform_indices = @transform_0, window_bounds = array<i64: 8, 2>}, {pipeline_mode = #tpu.pipeline_mode<synchronous>, transform_indices = @transform_1, window_bounds = array<i64: 8, 1>}, {pipeline_mode = #tpu.pipeline_mode<synchronous>, transform_indices = @transform_2, window_bounds = array<i64: 8, 1>}, {transform_indices = @transform_3, window_bounds = array<i64: 1, 8, 16, 18>}, {transform_indices = @transform_4, window_bounds = array<i64: 1, 8, 16, 16>}]} {
    %c0 = arith.constant 0 : index
    %c0_0 = arith.constant 0 : index
    %0 = vector.load %arg2[%c0, %c0_0] : memref<8x2xf32, #tpu.memory_space<vmem>>, vector<8x1xf32>
    %cst = arith.constant 0.001953125 : f32
    %1 = vector.broadcast %cst : f32 to vector<8x1xf32>
    %2 = arith.mulf %0, %1 : vector<8x1xf32>
    %c0_1 = arith.constant 0 : index
    %c1 = arith.constant 1 : index
    %3 = vector.load %arg2[%c0_1, %c1] : memref<8x2xf32, #tpu.memory_space<vmem>>, vector<8x1xf32>
    %cst_2 = arith.constant 0.001953125 : f32
    %4 = vector.broadcast %cst_2 : f32 to vector<8x1xf32>
    %5 = arith.mulf %3, %4 : vector<8x1xf32>
    %6 = arith.mulf %2, %2 : vector<8x1xf32>
    %7 = arith.subf %5, %6 : vector<8x1xf32>
    %c0_3 = arith.constant 0 : index
    %c0_4 = arith.constant 0 : index
    %8 = vector.load %arg3[%c0_3, %c0_4] : memref<8x1xf32, #tpu.memory_space<vmem>>, vector<8x1xf32>
    %cst_5 = arith.constant 9.99999974E-6 : f32
    %9 = vector.broadcast %cst_5 : f32 to vector<8x1xf32>
    %10 = arith.addf %7, %9 : vector<8x1xf32>
    %11 = math.rsqrt %10 : vector<8x1xf32>
    %12 = arith.mulf %8, %11 : vector<8x1xf32>
    %c0_6 = arith.constant 0 : index
    %c0_7 = arith.constant 0 : index
    %13 = vector.load %arg4[%c0_6, %c0_7] : memref<8x1xf32, #tpu.memory_space<vmem>>, vector<8x1xf32>
    %14 = arith.mulf %2, %12 : vector<8x1xf32>
    %15 = arith.subf %13, %14 : vector<8x1xf32>
    %c0_8 = arith.constant 0 : index
    %c0_9 = arith.constant 0 : index
    %c0_10 = arith.constant 0 : index
    %c0_11 = arith.constant 0 : index
    %16 = vector.load %arg5[%c0_8, %c0_9, %c0_10, %c0_11] : memref<1x8x16x18xf32, #tpu.memory_space<vmem>>, vector<1x8x16x16xf32>
    %17 = vector.shape_cast %16 : vector<1x8x16x16xf32> to vector<8x16x16xf32>
    %18 = vector.shape_cast %12 : vector<8x1xf32> to vector<8x1x1xf32>
    %19 = vector.broadcast %18 : vector<8x1x1xf32> to vector<8x16x16xf32>
    %20 = arith.mulf %17, %19 : vector<8x16x16xf32>
    %21 = vector.shape_cast %15 : vector<8x1xf32> to vector<8x1x1xf32>
    %22 = vector.broadcast %21 : vector<8x1x1xf32> to vector<8x16x16xf32>
    %23 = arith.addf %20, %22 : vector<8x16x16xf32>
    %cst_12 = arith.constant 0.000000e+00 : f32
    %24 = vector.broadcast %cst_12 : f32 to vector<8x16x16xf32>
    %25 = arith.cmpf oge, %23, %24 : vector<8x16x16xf32>
    %cst_13 = arith.constant 2.000000e-01 : f32
    %26 = vector.broadcast %cst_13 : f32 to vector<8x16x16xf32>
    %27 = arith.mulf %26, %23 : vector<8x16x16xf32>
    %28 = arith.select %25, %23, %27 : vector<8x16x16xi1>, vector<8x16x16xf32>
    %c0_14 = arith.constant 0 : index
    %c0_15 = arith.constant 0 : index
    %c0_16 = arith.constant 0 : index
    %c0_17 = arith.constant 0 : index
    %29 = vector.load %arg6[%c0_14, %c0_15, %c0_16, %c0_17] : memref<1x8x16x16xf32, #tpu.memory_space<vmem>>, vector<1x8x16x16xf32>
    %30 = vector.shape_cast %29 : vector<1x8x16x16xf32> to vector<8x16x16xf32>
    %31 = vector.shape_cast %28 : vector<8x16x16xf32> to vector<1x8x16x16xf32>
    tpu.vector_store %arg6[%c0_14, %c0_15, %c0_16, %c0_17], %31 {strides = array<i32>} : memref<1x8x16x16xf32, #tpu.memory_space<vmem>>, vector<1x8x16x16xf32>,
    return
  }
  func.func @transform_0(%arg0: i32, %arg1: i32) -> (i32, i32) {
    %c0_i32 = arith.constant 0 : i32
    %c0_i32_0 = arith.constant 0 : i32
    %c0_i32_1 = arith.constant 0 : i32
    return %c0_i32, %c0_i32_0 : i32, i32
  }
  func.func @transform_1(%arg0: i32, %arg1: i32) -> (i32, i32) {
    %c0_i32 = arith.constant 0 : i32
    %c0_i32_0 = arith.constant 0 : i32
    %c0_i32_1 = arith.constant 0 : i32
    return %c0_i32, %c0_i32_0 : i32, i32
  }
  func.func @transform_2(%arg0: i32, %arg1: i32) -> (i32, i32) {
    %c0_i32 = arith.constant 0 : i32
    %c0_i32_0 = arith.constant 0 : i32
    %c0_i32_1 = arith.constant 0 : i32
    return %c0_i32, %c0_i32_0 : i32, i32
  }
  func.func @transform_3(%arg0: i32, %arg1: i32) -> (i32, i32, i32, i32) {
    %c0_i32 = arith.constant 0 : i32
    %c0_i32_0 = arith.constant 0 : i32
    %c0_i32_1 = arith.constant 0 : i32
    return %arg0, %c0_i32, %arg1, %c0_i32_0 : i32, i32, i32, i32
  }
  func.func @transform_4(%arg0: i32, %arg1: i32) -> (i32, i32, i32, i32) {
    %c0_i32 = arith.constant 0 : i32
    %c0_i32_0 = arith.constant 0 : i32
    %c0_i32_1 = arith.constant 0 : i32
    return %arg0, %c0_i32, %arg1, %c0_i32_0 : i32, i32, i32, i32
  }
}

module attributes {stable_mosaic.version = 11 : i64} {
  func.func @conv_stats_kernel(%arg0: i32, %arg1: memref<1x4x326xf32, #tpu.memory_space<vmem>>, %arg2: memref<9x8x4xf32, #tpu.memory_space<vmem>>, %arg3: memref<1x288xf32, #tpu.memory_space<vmem>>, %arg4: memref<1x8x288xf32, #tpu.memory_space<vmem>>, %arg5: memref<8x2xf32, #tpu.memory_space<vmem>>) attributes {dimension_semantics = [#tpu.dimension_semantics<arbitrary>], iteration_bounds = array<i64: 2>, scalar_prefetch = 0 : i64, scratch_operands = 0 : i64, tpu.core_type = #tpu.core_type<tc>, window_params = [{transform_indices = @transform_0, window_bounds = array<i64: 1, 4, 326>}, {pipeline_mode = #tpu.pipeline_mode<synchronous>, transform_indices = @transform_1, window_bounds = array<i64: 9, 8, 4>}, {pipeline_mode = #tpu.pipeline_mode<synchronous>, transform_indices = @transform_2, window_bounds = array<i64: 1, 288>}, {transform_indices = @transform_3, window_bounds = array<i64: 1, 8, 288>}, {pipeline_mode = #tpu.pipeline_mode<synchronous>, transform_indices = @transform_4, window_bounds = array<i64: 8, 2>}]} {
    %c0_i32 = arith.constant 0 : i32
    %0 = arith.cmpi eq, %arg0, %c0_i32 : i32
    %1 = arith.extui %0 : i1 to i32
    %c0_i32_0 = arith.constant 0 : i32
    %2 = arith.cmpi ne, %1, %c0_i32_0 : i32
    scf.if %2 {
      %cst_63 = arith.constant 0.000000e+00 : f32
      %73 = vector.broadcast %cst_63 : f32 to vector<8x2xf32>
      %c0_64 = arith.constant 0 : index
      %c0_65 = arith.constant 0 : index
      %74 = vector.load %arg5[%c0_64, %c0_65] : memref<8x2xf32, #tpu.memory_space<vmem>>, vector<8x2xf32>
      tpu.vector_store %arg5[%c0_64, %c0_65], %73 {strides = array<i32>} : memref<8x2xf32, #tpu.memory_space<vmem>>, vector<8x2xf32>,
    } else {
    }
    %c0 = arith.constant 0 : index
    %c0_1 = arith.constant 0 : index
    %c0_2 = arith.constant 0 : index
    %3 = vector.load %arg1[%c0, %c0_1, %c0_2] : memref<1x4x326xf32, #tpu.memory_space<vmem>>, vector<1x4x288xf32>
    %4 = vector.shape_cast %3 : vector<1x4x288xf32> to vector<4x288xf32>
    %c0_3 = arith.constant 0 : index
    %c0_4 = arith.constant 0 : index
    %c0_5 = arith.constant 0 : index
    %5 = vector.load %arg2[%c0_3, %c0_4, %c0_5] : memref<9x8x4xf32, #tpu.memory_space<vmem>>, vector<1x8x4xf32>
    %6 = vector.shape_cast %5 : vector<1x8x4xf32> to vector<8x4xf32>
    %cst = arith.constant dense<0.000000e+00> : vector<8x288xf32>
    %7 = tpu.matmul %6, %4, %cst {dimension_numbers = #tpu.dot_dimension_numbers<[1], [0], [0], [1], [0, 0, 1, 1], [], []>} : vector<8x4xf32>, vector<4x288xf32>, vector<8x288xf32> -> vector<8x288xf32>
    %c0_6 = arith.constant 0 : index
    %c0_7 = arith.constant 0 : index
    %c1 = arith.constant 1 : index
    %8 = vector.load %arg1[%c0_6, %c0_7, %c1] : memref<1x4x326xf32, #tpu.memory_space<vmem>>, vector<1x4x288xf32>
    %9 = vector.shape_cast %8 : vector<1x4x288xf32> to vector<4x288xf32>
    %c1_8 = arith.constant 1 : index
    %c0_9 = arith.constant 0 : index
    %c0_10 = arith.constant 0 : index
    %10 = vector.load %arg2[%c1_8, %c0_9, %c0_10] : memref<9x8x4xf32, #tpu.memory_space<vmem>>, vector<1x8x4xf32>
    %11 = vector.shape_cast %10 : vector<1x8x4xf32> to vector<8x4xf32>
    %cst_11 = arith.constant dense<0.000000e+00> : vector<8x288xf32>
    %12 = tpu.matmul %11, %9, %cst_11 {dimension_numbers = #tpu.dot_dimension_numbers<[1], [0], [0], [1], [0, 0, 1, 1], [], []>} : vector<8x4xf32>, vector<4x288xf32>, vector<8x288xf32> -> vector<8x288xf32>
    %13 = arith.addf %7, %12 : vector<8x288xf32>
    %c0_12 = arith.constant 0 : index
    %c0_13 = arith.constant 0 : index
    %c2 = arith.constant 2 : index
    %14 = vector.load %arg1[%c0_12, %c0_13, %c2] : memref<1x4x326xf32, #tpu.memory_space<vmem>>, vector<1x4x288xf32>
    %15 = vector.shape_cast %14 : vector<1x4x288xf32> to vector<4x288xf32>
    %c2_14 = arith.constant 2 : index
    %c0_15 = arith.constant 0 : index
    %c0_16 = arith.constant 0 : index
    %16 = vector.load %arg2[%c2_14, %c0_15, %c0_16] : memref<9x8x4xf32, #tpu.memory_space<vmem>>, vector<1x8x4xf32>
    %17 = vector.shape_cast %16 : vector<1x8x4xf32> to vector<8x4xf32>
    %cst_17 = arith.constant dense<0.000000e+00> : vector<8x288xf32>
    %18 = tpu.matmul %17, %15, %cst_17 {dimension_numbers = #tpu.dot_dimension_numbers<[1], [0], [0], [1], [0, 0, 1, 1], [], []>} : vector<8x4xf32>, vector<4x288xf32>, vector<8x288xf32> -> vector<8x288xf32>
    %19 = arith.addf %13, %18 : vector<8x288xf32>
    %c0_18 = arith.constant 0 : index
    %c0_19 = arith.constant 0 : index
    %c18 = arith.constant 18 : index
    %20 = vector.load %arg1[%c0_18, %c0_19, %c18] : memref<1x4x326xf32, #tpu.memory_space<vmem>>, vector<1x4x288xf32>
    %21 = vector.shape_cast %20 : vector<1x4x288xf32> to vector<4x288xf32>
    %c3 = arith.constant 3 : index
    %c0_20 = arith.constant 0 : index
    %c0_21 = arith.constant 0 : index
    %22 = vector.load %arg2[%c3, %c0_20, %c0_21] : memref<9x8x4xf32, #tpu.memory_space<vmem>>, vector<1x8x4xf32>
    %23 = vector.shape_cast %22 : vector<1x8x4xf32> to vector<8x4xf32>
    %cst_22 = arith.constant dense<0.000000e+00> : vector<8x288xf32>
    %24 = tpu.matmul %23, %21, %cst_22 {dimension_numbers = #tpu.dot_dimension_numbers<[1], [0], [0], [1], [0, 0, 1, 1], [], []>} : vector<8x4xf32>, vector<4x288xf32>, vector<8x288xf32> -> vector<8x288xf32>
    %25 = arith.addf %19, %24 : vector<8x288xf32>
    %c0_23 = arith.constant 0 : index
    %c0_24 = arith.constant 0 : index
    %c19 = arith.constant 19 : index
    %26 = vector.load %arg1[%c0_23, %c0_24, %c19] : memref<1x4x326xf32, #tpu.memory_space<vmem>>, vector<1x4x288xf32>
    %27 = vector.shape_cast %26 : vector<1x4x288xf32> to vector<4x288xf32>
    %c4 = arith.constant 4 : index
    %c0_25 = arith.constant 0 : index
    %c0_26 = arith.constant 0 : index
    %28 = vector.load %arg2[%c4, %c0_25, %c0_26] : memref<9x8x4xf32, #tpu.memory_space<vmem>>, vector<1x8x4xf32>
    %29 = vector.shape_cast %28 : vector<1x8x4xf32> to vector<8x4xf32>
    %cst_27 = arith.constant dense<0.000000e+00> : vector<8x288xf32>
    %30 = tpu.matmul %29, %27, %cst_27 {dimension_numbers = #tpu.dot_dimension_numbers<[1], [0], [0], [1], [0, 0, 1, 1], [], []>} : vector<8x4xf32>, vector<4x288xf32>, vector<8x288xf32> -> vector<8x288xf32>
    %31 = arith.addf %25, %30 : vector<8x288xf32>
    %c0_28 = arith.constant 0 : index
    %c0_29 = arith.constant 0 : index
    %c20 = arith.constant 20 : index
    %32 = vector.load %arg1[%c0_28, %c0_29, %c20] : memref<1x4x326xf32, #tpu.memory_space<vmem>>, vector<1x4x288xf32>
    %33 = vector.shape_cast %32 : vector<1x4x288xf32> to vector<4x288xf32>
    %c5 = arith.constant 5 : index
    %c0_30 = arith.constant 0 : index
    %c0_31 = arith.constant 0 : index
    %34 = vector.load %arg2[%c5, %c0_30, %c0_31] : memref<9x8x4xf32, #tpu.memory_space<vmem>>, vector<1x8x4xf32>
    %35 = vector.shape_cast %34 : vector<1x8x4xf32> to vector<8x4xf32>
    %cst_32 = arith.constant dense<0.000000e+00> : vector<8x288xf32>
    %36 = tpu.matmul %35, %33, %cst_32 {dimension_numbers = #tpu.dot_dimension_numbers<[1], [0], [0], [1], [0, 0, 1, 1], [], []>} : vector<8x4xf32>, vector<4x288xf32>, vector<8x288xf32> -> vector<8x288xf32>
    %37 = arith.addf %31, %36 : vector<8x288xf32>
    %c0_33 = arith.constant 0 : index
    %c0_34 = arith.constant 0 : index
    %c36 = arith.constant 36 : index
    %38 = vector.load %arg1[%c0_33, %c0_34, %c36] : memref<1x4x326xf32, #tpu.memory_space<vmem>>, vector<1x4x288xf32>
    %39 = vector.shape_cast %38 : vector<1x4x288xf32> to vector<4x288xf32>
    %c6 = arith.constant 6 : index
    %c0_35 = arith.constant 0 : index
    %c0_36 = arith.constant 0 : index
    %40 = vector.load %arg2[%c6, %c0_35, %c0_36] : memref<9x8x4xf32, #tpu.memory_space<vmem>>, vector<1x8x4xf32>
    %41 = vector.shape_cast %40 : vector<1x8x4xf32> to vector<8x4xf32>
    %cst_37 = arith.constant dense<0.000000e+00> : vector<8x288xf32>
    %42 = tpu.matmul %41, %39, %cst_37 {dimension_numbers = #tpu.dot_dimension_numbers<[1], [0], [0], [1], [0, 0, 1, 1], [], []>} : vector<8x4xf32>, vector<4x288xf32>, vector<8x288xf32> -> vector<8x288xf32>
    %43 = arith.addf %37, %42 : vector<8x288xf32>
    %c0_38 = arith.constant 0 : index
    %c0_39 = arith.constant 0 : index
    %c37 = arith.constant 37 : index
    %44 = vector.load %arg1[%c0_38, %c0_39, %c37] : memref<1x4x326xf32, #tpu.memory_space<vmem>>, vector<1x4x288xf32>
    %45 = vector.shape_cast %44 : vector<1x4x288xf32> to vector<4x288xf32>
    %c7 = arith.constant 7 : index
    %c0_40 = arith.constant 0 : index
    %c0_41 = arith.constant 0 : index
    %46 = vector.load %arg2[%c7, %c0_40, %c0_41] : memref<9x8x4xf32, #tpu.memory_space<vmem>>, vector<1x8x4xf32>
    %47 = vector.shape_cast %46 : vector<1x8x4xf32> to vector<8x4xf32>
    %cst_42 = arith.constant dense<0.000000e+00> : vector<8x288xf32>
    %48 = tpu.matmul %47, %45, %cst_42 {dimension_numbers = #tpu.dot_dimension_numbers<[1], [0], [0], [1], [0, 0, 1, 1], [], []>} : vector<8x4xf32>, vector<4x288xf32>, vector<8x288xf32> -> vector<8x288xf32>
    %49 = arith.addf %43, %48 : vector<8x288xf32>
    %c0_43 = arith.constant 0 : index
    %c0_44 = arith.constant 0 : index
    %c38 = arith.constant 38 : index
    %50 = vector.load %arg1[%c0_43, %c0_44, %c38] : memref<1x4x326xf32, #tpu.memory_space<vmem>>, vector<1x4x288xf32>
    %51 = vector.shape_cast %50 : vector<1x4x288xf32> to vector<4x288xf32>
    %c8 = arith.constant 8 : index
    %c0_45 = arith.constant 0 : index
    %c0_46 = arith.constant 0 : index
    %52 = vector.load %arg2[%c8, %c0_45, %c0_46] : memref<9x8x4xf32, #tpu.memory_space<vmem>>, vector<1x8x4xf32>
    %53 = vector.shape_cast %52 : vector<1x8x4xf32> to vector<8x4xf32>
    %cst_47 = arith.constant dense<0.000000e+00> : vector<8x288xf32>
    %54 = tpu.matmul %53, %51, %cst_47 {dimension_numbers = #tpu.dot_dimension_numbers<[1], [0], [0], [1], [0, 0, 1, 1], [], []>} : vector<8x4xf32>, vector<4x288xf32>, vector<8x288xf32> -> vector<8x288xf32>
    %55 = arith.addf %49, %54 : vector<8x288xf32>
    %c0_48 = arith.constant 0 : index
    %c0_49 = arith.constant 0 : index
    %c0_50 = arith.constant 0 : index
    %56 = vector.load %arg4[%c0_48, %c0_49, %c0_50] : memref<1x8x288xf32, #tpu.memory_space<vmem>>, vector<1x8x288xf32>
    %57 = vector.shape_cast %56 : vector<1x8x288xf32> to vector<8x288xf32>
    %58 = vector.shape_cast %55 : vector<8x288xf32> to vector<1x8x288xf32>
    tpu.vector_store %arg4[%c0_48, %c0_49, %c0_50], %58 {strides = array<i32>} : memref<1x8x288xf32, #tpu.memory_space<vmem>>, vector<1x8x288xf32>,
    %c0_51 = arith.constant 0 : index
    %c0_52 = arith.constant 0 : index
    %59 = vector.load %arg3[%c0_51, %c0_52] : memref<1x288xf32, #tpu.memory_space<vmem>>, vector<1x288xf32>
    %60 = vector.broadcast %59 : vector<1x288xf32> to vector<8x288xf32>
    %61 = arith.mulf %55, %60 : vector<8x288xf32>
    %c0_53 = arith.constant 0 : index
    %c0_54 = arith.constant 0 : index
    %62 = vector.load %arg5[%c0_53, %c0_54] : memref<8x2xf32, #tpu.memory_space<vmem>>, vector<8x1xf32>
    %cst_55 = arith.constant dense<0.000000e+00> : vector<8xf32>
    %63 = vector.multi_reduction <add>, %61, %cst_55 [1] : vector<8x288xf32> to vector<8xf32>
    %64 = vector.shape_cast %63 : vector<8xf32> to vector<8x1xf32>
    %65 = arith.addf %62, %64 : vector<8x1xf32>
    %c0_56 = arith.constant 0 : index
    %c0_57 = arith.constant 0 : index
    %66 = vector.load %arg5[%c0_56, %c0_57] : memref<8x2xf32, #tpu.memory_space<vmem>>, vector<8x1xf32>
    tpu.vector_store %arg5[%c0_56, %c0_57], %65 {strides = array<i32>} : memref<8x2xf32, #tpu.memory_space<vmem>>, vector<8x1xf32>,
    %c0_58 = arith.constant 0 : index
    %c1_59 = arith.constant 1 : index
    %67 = vector.load %arg5[%c0_58, %c1_59] : memref<8x2xf32, #tpu.memory_space<vmem>>, vector<8x1xf32>
    %68 = arith.mulf %61, %55 : vector<8x288xf32>
    %cst_60 = arith.constant dense<0.000000e+00> : vector<8xf32>
    %69 = vector.multi_reduction <add>, %68, %cst_60 [1] : vector<8x288xf32> to vector<8xf32>
    %70 = vector.shape_cast %69 : vector<8xf32> to vector<8x1xf32>
    %71 = arith.addf %67, %70 : vector<8x1xf32>
    %c0_61 = arith.constant 0 : index
    %c1_62 = arith.constant 1 : index
    %72 = vector.load %arg5[%c0_61, %c1_62] : memref<8x2xf32, #tpu.memory_space<vmem>>, vector<8x1xf32>
    tpu.vector_store %arg5[%c0_61, %c1_62], %71 {strides = array<i32>} : memref<8x2xf32, #tpu.memory_space<vmem>>, vector<8x1xf32>,
    return
  }
  func.func @transform_0(%arg0: i32) -> (i32, i32, i32) {
    %c0_i32 = arith.constant 0 : i32
    %c0_i32_0 = arith.constant 0 : i32
    %c0_i32_1 = arith.constant 0 : i32
    return %arg0, %c0_i32, %c0_i32_0 : i32, i32, i32
  }
  func.func @transform_1(%arg0: i32) -> (i32, i32, i32) {
    %c0_i32 = arith.constant 0 : i32
    %c0_i32_0 = arith.constant 0 : i32
    %c0_i32_1 = arith.constant 0 : i32
    %c0_i32_2 = arith.constant 0 : i32
    return %c0_i32, %c0_i32_0, %c0_i32_1 : i32, i32, i32
  }
  func.func @transform_2(%arg0: i32) -> (i32, i32) {
    %c0_i32 = arith.constant 0 : i32
    %c0_i32_0 = arith.constant 0 : i32
    %c0_i32_1 = arith.constant 0 : i32
    return %c0_i32, %c0_i32_0 : i32, i32
  }
  func.func @transform_3(%arg0: i32) -> (i32, i32, i32) {
    %c0_i32 = arith.constant 0 : i32
    %c0_i32_0 = arith.constant 0 : i32
    %c0_i32_1 = arith.constant 0 : i32
    return %arg0, %c0_i32, %c0_i32_0 : i32, i32, i32
  }
  func.func @transform_4(%arg0: i32) -> (i32, i32) {
    %c0_i32 = arith.constant 0 : i32
    %c0_i32_0 = arith.constant 0 : i32
    %c0_i32_1 = arith.constant 0 : i32
    return %c0_i32, %c0_i32_0 : i32, i32
  }
}

</mosaic_0001>

<bundles_post_ra>
// kernel: conv_block_forward.3
= control target key start
LH: loop header
LB: loop body
LE: loop exit
PB: predicated region body
PF: predicated region fallthrough
CT: control target
= control target key end

     0   :  { %9 = vsyncpa [#allocation3], 0  ;;  %s1062_s0 = inlined_call_operand.vmem [shape: f32[8,2], index: 0, kind: input, shape index: {}]   ;;  %s1063_s1 = inlined_call_operand.vmem [shape: f32[8,1], index: 1, kind: input, shape index: {}]   ;;  %s1064_s2 = inlined_call_operand.vmem [shape: f32[8,1], index: 2, kind: input, shape index: {}]   ;;  %s1065_s3 = inlined_call_operand.vmem [shape: f32[2,8,16,18], index: 3, kind: input, shape index: {}]   ;;  %s1066_s4 = inlined_call_operand.hbm [shape: f32[2,8,16,16], index: 4, kind: output, shape index: {}]  }
   0x1   :  { %11 = vsyncpa [#allocation3 + $0x1], 0  ;;  %s874_s15 = smov 0   ;;  %s876_s16 = smov 0  }
   0x2   :  { %s878_s17 = smov 0   ;;  %s880_s18 = smov 0  }
   0x3   :  { %s882_s19 = smov 0   ;;  %s884_s20 = smov 0  }
   0x4 LB: > { %s682_s21 = sadd.s32 4294967295, %s840_s20   ;;  %s683_s22 = sadd.s32 4294967294, %s840_s20   ;;  %s840_s20 = sphi %s884_s20, %s17_s20   ;;  %s836_s19 = sphi %s882_s19, %s1073_s19   ;;  %s832_s18 = sphi %s880_s18, %s1072_s18   ;;  %s828_s17 = sphi %s878_s17, %s1071_s17   ;;  %s824_s16 = sphi %s876_s16, %s1070_s16   ;;  %s820_s15 = sphi %s874_s15, %s1069_s15  }
   0x5   : > { %s29_s23 = sadd.s32 1, %s836_s19  ;;  %s129_s24 = sadd.s32 1, %s828_s17 }
   0x6   : > { %p31_p0 = scmp.ge.s32.totalorder %s29_s23, 2  ;;  %p139_p1 = scmp.ne.s32.totalorder %s828_s17, %s824_s16 }
   0x7   : > { %p140_p2 = scmp.eq.s32.totalorder %s682_s21, 1  ;;  %p145_p3 = scmp.ne.s32.totalorder %s824_s16, %s820_s15 }
   0x8   : > { %s1075_s23 = smov (%p31_p0, %s29_s23), 0  ;;  %p146_p5 = scmp.eq.s32.totalorder %s683_s22, 1 }
   0x9   : > { %p914_p4 = por %p140_p2, %p139_p1  ;;  %s124_s26 = ssub.s32 %s836_s19, %s1075_s23 }
   0xa   : > { %p686_p6 = scmp.ge.s32.totalorder %s840_s20, 1  ;;  %p127_p7 = scmp.eq.s32.totalorder %s124_s26, 0 }
   0xb   : > { %p921_p8 = por %p146_p5, %p145_p3  ;;  %p186_p9 = scmp.lt.s32.totalorder %s840_s20, 3 }
   0xc   : > { %s927_s28 = scalar_select %p127_p7, %s828_s17, %s129_s24  }
   0xd   : > { %p187_p10 = pnand %p686_p6, %p186_p9 }
   0xe   : > { %v227_v0 = vld [vmem:[%s1062_s0] sm:$0xff] (!%p187_p10)  ;;  %s842_s5 = smov (!%p187_p10), 1   ;;  %v843_v6 = vmov (!%p187_p10), 0   ;;  %s844_s6 = smov (!%p187_p10), 127   ;;  %v845_v8 = vmov (!%p187_p10), 1966171168   ;;  %v267_v10 = vlaneseq (!%p187_p10) }
   0xf   : > { %190 = sbr.rel (%p187_p10) target bundleno = 453 (0x1c5), region = 36  ;;  %v228_v1 = vmul.f32 (!%p187_p10), 0.001953125, %v227_v0  ;;  %758 = vset.pattern.permute.xlu1 (!%p187_p10), %v843_v6  ;;  %759 = vset.pattern.permute.xlu0 (!%p187_p10), %v843_v6  ;;  %v265_v9 = vunpack.c.l.s4 (!%p187_p10), %v845_v8  ;;  %v235_v13 = vld [vmem:[%s1063_s1] sm:$0xff] (!%p187_p10)  ;;  %p217_p11 = scmp.lt.s32.totalorder (!%p187_p10), %s832_s18, 1  ;;  %vm570_vm0 = vcmask (!%p187_p10), 130048  }
  0x10   : > { %v268_v12 = vshrl.u32 (!%p187_p10), %v267_v10, 7  ;;  %v243_v17 = vld [vmem:[%s1064_s2] sm:$0xff] (!%p187_p10)  ;;  %s213_s22 = sand.u32 (!%p187_p10), 1, %s824_s16   ;;  %s696_s29 = sshll.u32 (!%p187_p10), %s832_s18, 11 }
  0x11   : > { %v229_v2 = vmul.f32 (!%p187_p10), %v228_v1, %v228_v1  ;;  %v266_v11 = vunpack.c.0.s8 (!%p187_p10), %v265_v9  ;;  %s952_s24 = sshll.u32 (!%p187_p10), %s213_s22, 7  ;;  %s1016_s7 = scalar_lea.sflag (!%p187_p10), [#allocation3], %s213_s22 }
  0x12   : > { %v314_v18 = vsub.s32 (!%p187_p10), 0, %v268_v12  ;;  %s967_s26 = scalar_lea.vmem (!%p187_p10), [#allocation2], %s952_s24  ;;  %s846_s9 = smov (!%p187_p10), [#allocation2]  }
  0x13   : > { %231 = vrot.lane.b32.xlu0 (!%p187_p10), %v229_v2, %s842_s5  ;;  %v269_v14 = vsub.s32 (!%p187_p10), %v266_v11, %v268_v12  ;;  %s603_s30 = sshll.u32 (!%p187_p10), %s967_s26, 4  ;;  %s766_s10 = sshll.u32 (!%p187_p10), %s846_s9, 4  ;;  %s1008_s30 = int_to_ptr.vmem [resolvable:$true] %s603_s30  ;;  %s767_s10 = int_to_ptr.vmem [resolvable:$false] %s766_s10 }
  0x14   : > { %s762_s8 = scalar_lea.vmem (!%p187_p10), %s1008_s30, 2048  ;;  %p769_p1 = scmp.lt.s32.totalorder (!%p187_p10), %s1008_s30, %s767_s10 }
  0x15   : > { %p763_p12 = scmp.ne.s32.totalorder (!%p187_p10), %s1008_s30, %s762_s8 }
  0x16   : > { %s218_s11 = scalar_select %p217_p11, %s832_s18, 1 }
  0x17   : > { %p764_p13 = pnand %p763_p12, %p914_p4 }
  0x18   : > { %s695_s12 = sshll.u32 %s218_s11, 7  ;;  %s768_s11 = scalar_lea.vmem %s767_s10, 4096 }
  0x19   : > { %s943_s21 = scalar_lea.vmem %s1065_s3, %s695_s12  ;;  %p765_p0 = pneg %p764_p13 }
  0x1a   : > { %v252_v10 = vld [vmem:[%s943_s21 + $0x30] sm:$0xff]  ;;  %v253_v11 = vld [vmem:[%s943_s21 + $0x38] sm:$0xff]  ;;  %v246_v12 = vld [vmem:[%s943_s21] sm:$0xff]  ;;  %p770_p2 = scmp.lt.s32.totalorder %s768_s11, %s762_s8 }
  0x1c   : > { %p771_p3 = por %p770_p2, %p769_p1 }
  0x1e   : > { %p772_p5 = pnand %p771_p3, %p765_p0 }
  0x85   : > { %v232_v3 = vpop.permute.xlu0 %231 }
  0x86   : > { %v234_v4 = vsub.f32 %v228_v1, %v232_v3 }
  0x88   : > { %v236_v5 = vadd.f32 1e-05, %v234_v4  ;;  %v248_v4 = vld [vmem:[%s943_s21 + $0x10] sm:$0xff] }
  0x8a   : > { %760 = vrsqrt.f32 %v236_v5  ;;  %v249_v5 = vld [vmem:[%s943_s21 + $0x18] sm:$0xff] }
  0x94   : > { %v761_v7 = vpop.eup %760 }
  0x95   : > { %239 = vrot.lane.b32.xlu0 %v761_v7, %s844_s6  ;;  %s1006_s6 = scalar_lea.hbm %s1066_s4, %s696_s29 }
 0x107   : > { %v240_v15 = vpop.permute.xlu0 %239 }
 0x108   : > { %v242_v16 = vmul.f32 %v240_v15, %v235_v13  ;;  %v247_v13 = vld [vmem:[%s943_s21 + $0x8] sm:$0xff]  ;;  %v250_v15 = vld [vmem:[%s943_s21 + $0x20] sm:$0xff] }
 0x10a   : > { %v244_v19 = vmul.f32 %v242_v16, %v228_v1  ;;  %v263_v20 = vcombine.high %v242_v16, %v242_v16  ;;  %v270_v21 = vrot.slane %v242_v16, %v269_v14  ;;  %v251_v16 = vld [vmem:[%s943_s21 + $0x28] sm:$0xff] }
 0x10c   : > { %v245_v22 = vsub.f32 %v243_v17, %v244_v19  ;;  %v277_v23 = vrot.slane %v263_v20, %v269_v14  ;;  %v278_v24 = vcombine.high %v270_v21, %v270_v21  ;;  %v286_v25 = vrot.slane %v270_v21, %v269_v14  ;;  %v256_v17 = vld [vmem:[%s943_s21 + $0x50] sm:$0xff]  ;;  %v257_v20 = vld [vmem:[%s943_s21 + $0x58] sm:$0xff]  ;;  %v254_v21 = vld [vmem:[%s943_s21 + $0x40] sm:$0xff] }
 0x10e   : > { %v315_v26 = vrot.slane %v286_v25, %v314_v18  ;;  %v308_v27 = vcombine.high %v286_v25, %v286_v25  ;;  %v300_v28 = vrot.slane %v278_v24, %v269_v14  ;;  %v279_v29 = vcombine.high %v277_v23, %v277_v23 }
 0x10f   : > { %v400_v30 = vrot.slane %v245_v22, %v269_v14  ;;  %v293_v34 = vrot.slane %v277_v23, %v269_v14  ;;  %v393_v35 = vcombine.high %v245_v22, %v245_v22  ;;  %v255_v22 = vld [vmem:[%s943_s21 + $0x48] sm:$0xff] }
 0x110   : > { %345 = vperm.xlu1 %758, %v315_v26   ;;  %v323_v31 = vrot.slane %v308_v27, %v314_v18  ;;  %v307_v32 = vrot.slane %v279_v29, %v269_v14  ;;  %v319_v33 = vrot.slane %v300_v28, %v314_v18  ;;  %v310_v40 = vcombine.high %v300_v28, %v300_v28 }
 0x111   : > { %v408_v38 = vcombine.high %v400_v30, %v400_v30  ;;  %v331_v39 = vrot.slane %v293_v34, %v314_v18  ;;  %v407_v43 = vrot.slane %v393_v35, %v269_v14  ;;  %v309_v45 = vcombine.high %v293_v34, %v293_v34  ;;  %v261_v34 = vld [vmem:[%s943_s21 + $0x78] sm:$0xff] }
 0x112   : > { %353 = vperm.xlu0 %759, %v323_v31   ;;  %v335_v36 = vrot.slane %v307_v32, %v314_v18  ;;  %v311_v37 = vcombine.high %v307_v32, %v307_v32  ;;  %v327_v44 = vrot.slane %v310_v40, %v314_v18  ;;  %v416_v50 = vrot.slane %v400_v30, %v269_v14 }
 0x113   : > { %v430_v42 = vrot.slane %v408_v38, %v269_v14  ;;  %v409_v48 = vcombine.high %v407_v43, %v407_v43  ;;  %v339_v49 = vrot.slane %v309_v45, %v314_v18  ;;  %v423_v58 = vrot.slane %v407_v43, %v269_v14 }
 0x114   : > { %349 = vperm.xlu1 %758, %v319_v33   ;;  %v343_v41 = vrot.slane %v311_v37, %v314_v18  ;;  %v445_v53 = vrot.slane %v416_v50, %v314_v18  ;;  %v438_v54 = vcombine.high %v416_v50, %v416_v50  ;;  %v260_v33 = vld [vmem:[%s943_s21 + $0x70] sm:$0xff] }
 0x115   : > { %v449_v46 = vrot.slane %v430_v42, %v314_v18  ;;  %v440_v47 = vcombine.high %v430_v42, %v430_v42  ;;  %v437_v52 = vrot.slane %v409_v48, %v269_v14  ;;  %v461_v60 = vrot.slane %v423_v58, %v314_v18 }
 0x116   : > { %365 = vperm.xlu0 %759, %v335_v36   ;;  %v453_v57 = vrot.slane %v438_v54, %v314_v18  ;;  %v439_v61 = vcombine.high %v423_v58, %v423_v58 }
 0x117   : > { %v457_v51 = vrot.slane %v440_v47, %v314_v18  ;;  %v465_v55 = vrot.slane %v437_v52, %v314_v18  ;;  %v441_v56 = vcombine.high %v437_v52, %v437_v52 }
 0x118   : > { %361 = vperm.xlu1 %758, %v331_v39   ;;  %v469_v62 = vrot.slane %v439_v61, %v314_v18 }
 0x119   : > { %v473_v59 = vrot.slane %v441_v56, %v314_v18 }
 0x11a   : > { %373 = vperm.xlu0 %759, %v343_v41  }
 0x11c   : > { %357 = vperm.xlu1 %758, %v327_v44  }
 0x11e   : > { %479 = vperm.xlu0 %759, %v449_v46  }
 0x120   : > { %369 = vperm.xlu1 %758, %v339_v49  }
 0x122   : > { %487 = vperm.xlu0 %759, %v457_v51  }
 0x124   : > { %475 = vperm.xlu1 %758, %v445_v53  }
 0x126   : > { %495 = vperm.xlu0 %759, %v465_v55  }
 0x128   : > { %483 = vperm.xlu1 %758, %v453_v57  }
 0x12a   : > { %503 = vperm.xlu0 %759, %v473_v59  }
 0x12c   : > { %491 = vperm.xlu1 %758, %v461_v60  }
 0x130   : > { %499 = vperm.xlu1 %758, %v469_v62  }
 0x18f   : > { %v346_v63 = vpop.permute.xlu1 %345 }
 0x190   : > { %v376_v28 = vmul.f32 %v346_v63, %v246_v12  ;;  %v377_v29 = vmul.f32 %v346_v63, %v247_v13 }
 0x191   : > { %v354_v0 = vpop.permute.xlu0 %353 }
 0x192   : > { %v380_v30 = vmul.f32 %v354_v0, %v250_v15  ;;  %v381_v31 = vmul.f32 %v354_v0, %v251_v16 }
 0x193   : > { %v350_v1 = vpop.permute.xlu1 %349 }
 0x194   : > { %v378_v8 = vmul.f32 %v350_v1, %v248_v4  ;;  %v379_v9 = vmul.f32 %v350_v1, %v249_v5  ;;  %v258_v1 = vld [vmem:[%s943_s21 + $0x60] sm:$0xff] }
 0x195   : > { %v366_v2 = vpop.permute.xlu0 %365 }
 0x196   : > { %v386_v39 = vmul.f32 %v366_v2, %v256_v17  ;;  %v387_v40 = vmul.f32 %v366_v2, %v257_v20  ;;  %v259_v2 = vld [vmem:[%s943_s21 + $0x68] sm:$0xff] }
 0x197   : > { %v362_v3 = vpop.permute.xlu1 %361 }
 0x198   : > { %v384_v41 = vmul.f32 %v362_v3, %v254_v21  ;;  %v385_v42 = vmul.f32 %v362_v3, %v255_v22 }
 0x199   : > { %v374_v6 = vpop.permute.xlu0 %373 }
 0x19a   : > { %v390_v46 = vmul.f32 %v374_v6, %v260_v33  ;;  %v391_v47 = vmul.f32 %v374_v6, %v261_v34 }
 0x19b   : > { %v358_v7 = vpop.permute.xlu1 %357 }
 0x19c   : > { %v382_v23 = vmul.f32 %v358_v7, %v252_v10  ;;  %v383_v24 = vmul.f32 %v358_v7, %v253_v11 }
 0x19d   : > { %v480_v14 = vpop.permute.xlu0 %479 }
 0x19e   : > { %v508_v18 = vadd.f32 %v480_v14, %v378_v8  ;;  %v509_v19 = vadd.f32 %v480_v14, %v379_v9 }
 0x19f   : > { %v962_v25 = vpop.permute.xlu1 %369 }
 0x1a0   : > { %vm524_vm1 = vcmp.ge.f32.partialorder %v508_v18, 0.0  ;;  %vm525_vm2 = vcmp.ge.f32.partialorder %v509_v19, 0.0  ;;  %v540_v26 = vmul.f32 0.2, %v508_v18  ;;  %v541_v27 = vmul.f32 0.2, %v509_v19 }
 0x1a1   : > { %v488_v32 = vpop.permute.xlu0 %487  ;;  %v388_v16 = vmul.f32 %v962_v25, %v258_v1  ;;  %v389_v17 = vmul.f32 %v962_v25, %v259_v2 }
 0x1a2   : > { %v556_v35 = vsel %vm524_vm1, %v508_v18, %v540_v26  ;;  %v557_v36 = vsel %vm525_vm2, %v509_v19, %v541_v27  ;;  %v512_v37 = vadd.f32 %v488_v32, %v382_v23  ;;  %v513_v38 = vadd.f32 %v488_v32, %v383_v24 }
 0x1a3   : > { %573 = vst.msk [vmem:[%s967_s26 + $0x10] sm:$0xff] %vm570_vm0, %v556_v35  ;;  %574 = vst.msk [vmem:[%s967_s26 + $0x18] sm:$0xff] %vm570_vm0, %v557_v36  ;;  %v476_v43 = vpop.permute.xlu1 %475 }
 0x1a4   : > { %vm528_vm3 = vcmp.ge.f32.partialorder %v512_v37, 0.0  ;;  %vm529_vm4 = vcmp.ge.f32.partialorder %v513_v38, 0.0  ;;  %v544_v44 = vmul.f32 0.2, %v512_v37  ;;  %v545_v45 = vmul.f32 0.2, %v513_v38 }
 0x1a5   : > { %v506_v48 = vadd.f32 %v476_v43, %v376_v28  ;;  %v507_v49 = vadd.f32 %v476_v43, %v377_v29  ;;  %v496_v50 = vpop.permute.xlu0 %495 }
 0x1a6   : > { %v560_v51 = vsel %vm528_vm3, %v512_v37, %v544_v44  ;;  %v561_v52 = vsel %vm529_vm4, %v513_v38, %v545_v45  ;;  %v516_v53 = vadd.f32 %v496_v50, %v386_v39  ;;  %v517_v54 = vadd.f32 %v496_v50, %v387_v40 }
 0x1a7   : > { %577 = vst.msk [vmem:[%s967_s26 + $0x30] sm:$0xff] %vm570_vm0, %v560_v51  ;;  %578 = vst.msk [vmem:[%s967_s26 + $0x38] sm:$0xff] %vm570_vm0, %v561_v52  ;;  %vm522_vm5 = vcmp.ge.f32.partialorder %v506_v48, 0.0  ;;  %vm523_vm6 = vcmp.ge.f32.partialorder %v507_v49, 0.0  ;;  %v538_v55 = vmul.f32 0.2, %v506_v48  ;;  %v484_v57 = vpop.permute.xlu1 %483 }
 0x1a8   : > { %v539_v56 = vmul.f32 0.2, %v507_v49  ;;  %vm532_vm7 = vcmp.ge.f32.partialorder %v516_v53, 0.0  ;;  %vm533_vm8 = vcmp.ge.f32.partialorder %v517_v54, 0.0  ;;  %v548_v58 = vmul.f32 0.2, %v516_v53 }
 0x1a9   : > { %v549_v59 = vmul.f32 0.2, %v517_v54  ;;  %v554_v60 = vsel %vm522_vm5, %v506_v48, %v538_v55  ;;  %v510_v62 = vadd.f32 %v484_v57, %v380_v30  ;;  %v511_v63 = vadd.f32 %v484_v57, %v381_v31  ;;  %v504_v0 = vpop.permute.xlu0 %503 }
 0x1aa   : > { %v555_v61 = vsel %vm523_vm6, %v507_v49, %v539_v56  ;;  %571 = vst.msk [vmem:[%s967_s26] sm:$0xff] %vm570_vm0, %v554_v60  ;;  %v564_v3 = vsel %vm532_vm7, %v516_v53, %v548_v58  ;;  %v520_v5 = vadd.f32 %v504_v0, %v390_v46  ;;  %v521_v6 = vadd.f32 %v504_v0, %v391_v47 }
 0x1ab   : > { %572 = vst.msk [vmem:[%s967_s26 + $0x8] sm:$0xff] %vm570_vm0, %v555_v61  ;;  %v565_v4 = vsel %vm533_vm8, %v517_v54, %v549_v59  ;;  %581 = vst.msk [vmem:[%s967_s26 + $0x50] sm:$0xff] %vm570_vm0, %v564_v3  ;;  %vm526_vm9 = vcmp.ge.f32.partialorder %v510_v62, 0.0  ;;  %vm527_vm10 = vcmp.ge.f32.partialorder %v511_v63, 0.0  ;;  %v542_v7 = vmul.f32 0.2, %v510_v62  ;;  %v492_v9 = vpop.permute.xlu1 %491 }
 0x1ac   : > { %582 = vst.msk [vmem:[%s967_s26 + $0x58] sm:$0xff] %vm570_vm0, %v565_v4  ;;  %v543_v8 = vmul.f32 0.2, %v511_v63  ;;  %vm536_vm11 = vcmp.ge.f32.partialorder %v520_v5, 0.0  ;;  %vm537_vm12 = vcmp.ge.f32.partialorder %v521_v6, 0.0  ;;  %v514_v14 = vadd.f32 %v492_v9, %v384_v41 }
 0x1ad   : > { %v552_v10 = vmul.f32 0.2, %v520_v5  ;;  %v553_v11 = vmul.f32 0.2, %v521_v6  ;;  %v558_v12 = vsel %vm526_vm9, %v510_v62, %v542_v7  ;;  %v515_v15 = vadd.f32 %v492_v9, %v385_v42 }
 0x1ae   : > { %v559_v13 = vsel %vm527_vm10, %v511_v63, %v543_v8  ;;  %575 = vst.msk [vmem:[%s967_s26 + $0x20] sm:$0xff] %vm570_vm0, %v558_v12  ;;  %vm530_vm13 = vcmp.ge.f32.partialorder %v514_v14, 0.0  ;;  %v546_v20 = vmul.f32 0.2, %v514_v14 }
 0x1af   : > { %576 = vst.msk [vmem:[%s967_s26 + $0x28] sm:$0xff] %vm570_vm0, %v559_v13  ;;  %v568_v18 = vsel %vm536_vm11, %v520_v5, %v552_v10  ;;  %v569_v19 = vsel %vm537_vm12, %v521_v6, %v553_v11  ;;  %vm531_vm14 = vcmp.ge.f32.partialorder %v515_v15, 0.0  ;;  %v547_v21 = vmul.f32 0.2, %v515_v15  ;;  %v500_v22 = vpop.permute.xlu1 %499 }
 0x1b0   : > { %585 = vst.msk [vmem:[%s967_s26 + $0x70] sm:$0xff] %vm570_vm0, %v568_v18  ;;  %586 = vst.msk [vmem:[%s967_s26 + $0x78] sm:$0xff] %vm570_vm0, %v569_v19  ;;  %v518_v23 = vadd.f32 %v500_v22, %v388_v16  ;;  %v519_v24 = vadd.f32 %v500_v22, %v389_v17  ;;  %v562_v25 = vsel %vm530_vm13, %v514_v14, %v546_v20 }
 0x1b1   : > { %v563_v26 = vsel %vm531_vm14, %v515_v15, %v547_v21  ;;  %579 = vst.msk [vmem:[%s967_s26 + $0x40] sm:$0xff] %vm570_vm0, %v562_v25 }
 0x1b2   : > { %580 = vst.msk [vmem:[%s967_s26 + $0x48] sm:$0xff] %vm570_vm0, %v563_v26  ;;  %vm534_vm15 = vcmp.ge.f32.partialorder %v518_v23, 0.0  ;;  %vm535_vm1 = vcmp.ge.f32.partialorder %v519_v24, 0.0  ;;  %v550_v27 = vmul.f32 0.2, %v518_v23 }
 0x1b3   : > { %v551_v28 = vmul.f32 0.2, %v519_v24 }
 0x1b4   : > { %v566_v29 = vsel %vm534_vm15, %v518_v23, %v550_v27 }
 0x1b5   : > { %v567_v30 = vsel %vm535_vm1, %v519_v24, %v551_v28  ;;  %583 = vst.msk [vmem:[%s967_s26 + $0x60] sm:$0xff] %vm570_vm0, %v566_v29 }
 0x1b6   : > { %584 = vst.msk [vmem:[%s967_s26 + $0x68] sm:$0xff] %vm570_vm0, %v567_v30 }
 0x1b7   : > { %775 = shalt.err (!%p772_p5)
}
 0x1b8   : > { %s776_s12 = scalar_lea.hbm %s1006_s6, 2048  ;;  %s780_s21 = scalar_lea.hbm %s1066_s4, 4096 }
 0x1b9   : > { %p777_p6 = scmp.ne.s32.totalorder %s1006_s6, %s776_s12  ;;  %p781_p10 = scmp.lt.u32.totalorder %s1006_s6, %s1066_s4 }
 0x1ba   : > { %p782_p11 = scmp.lt.u32.totalorder %s780_s21, %s776_s12  ;;  %p784_p13 = scmp.lt.u32.totalorder %s776_s12, %s1006_s6 }
 0x1bb   : > { %p778_p7 = pnand %p777_p6, %p914_p4 }
 0x1bc   : > { %p783_p12 = por %p782_p11, %p781_p10 }
 0x1bd   : > { %p779_p9 = pneg %p778_p7 }
 0x1be   : > { %p785_p0 = por %p784_p13, %p783_p12 }
 0x1c0   : > { %p786_p1 = pnand %p785_p0, %p779_p9 }
 0x1c2   : > { %789 = shalt.err (!%p786_p1)
}
 0x1c3   : > { %s847_s26 = smov 128   ;;  %s848_s29 = smov 8  }
 0x1c4   : > { %697 = dma.vmem_to_hbm [thread:$0]  (%p914_p4), %s1008_s30, 2048, %s1006_s6, %s1016_s7, %s847_s26, %s847_s26, %s848_s29  }
 0x1c5 PF: > { %p703_p2 = scmp.ge.s32.totalorder %s840_s20, 2  ;;  %s618_s18 = sand.u32 1, %s820_s15  }
 0x1c6   : > { %s619_s5 = scalar_lea.sflag [#allocation3], %s618_s18 }
 0x1c7   : > { %p700_p3 = pnand %p703_p2, %p921_p8 }
 0x1c9   : > { %815 = dma.done.wait (!%p700_p3), %s619_s5, 2048  }
 0x1ca   : > { %817 = vsyncadd (!%p700_p3), %s619_s5, 4294965248  ;;  %s17_s20 = sadd.s32 1, %s840_s20   ;;  %s1069_s15 = smov %s824_s16 }
 0x1cb   : > { %p14_p5 = scmp.ge.s32.totalorder %s17_s20, 4   ;;  %s1070_s16 = smov %s828_s17 }
 0x1cc   : > { %s1071_s17 = smov %s927_s28  ;;  %s1072_s18 = smov %s836_s19 }
 0x1cd   : > { %s1073_s19 = smov %s1075_s23  ;;  %16 = sbr.rel (!%p14_p5) target bundleno = 4 (0x4), region = 71 }
 0x1d4   :  { %624 = vsyncpa [#allocation3], 1 }
 0x1d5   :  { %626 = vsyncpa [#allocation3 + $0x1], 1 }

// kernel: conv_block_forward.2
= control target key start
LH: loop header
LB: loop body
LE: loop exit
PB: predicated region body
PF: predicated region fallthrough
CT: control target
= control target key end

     0   :  { %s2034_s15 = smov 0   ;;  %s2221_s0 = inlined_call_operand.vmem [shape: f32[2,4,326], index: 0, kind: input, shape index: {}]   ;;  %s2222_s1 = inlined_call_operand.vmem [shape: f32[9,8,4], index: 1, kind: input, shape index: {}]   ;;  %s2223_s2 = inlined_call_operand.vmem [shape: f32[1,288], index: 2, kind: input, shape index: {}]   ;;  %s2224_s3 = inlined_call_operand.vmem [shape: f32[2,8,288], index: 3, kind: output, shape index: {0}]   ;;  %s2225_s4 = inlined_call_operand.vmem [shape: f32[8,2], index: 4, kind: output, shape index: {1}]  }
   0x1 LB: > { %s1810_s16 = sadd.s32 4294967295, %s1996_s15   ;;  %p1814_p0 = scmp.ge.s32.totalorder %s1996_s15, 1  ;;  %s1996_s15 = sphi %s2034_s15, %s15_s15  }
   0x2   : > { %p160_p1 = scmp.lt.s32.totalorder %s1996_s15, 3 }
   0x4   : > { %p161_p2 = pnand %p1814_p0, %p160_p1 }
   0x5   : > { %p186_p3 = scmp.lt.s32.totalorder (!%p161_p2), %s1810_s16, 1  ;;  %p1817_p4 = scmp.ne.s32.totalorder (!%p161_p2), %s1810_s16, 0 }
   0x6   : > { %164 = sbr.rel (%p161_p2) target bundleno = 584 (0x248), region = 32 }
   0xd   : > { %s187_s17 = scalar_select %p186_p3, %s1810_s16, 1 }
   0xe   : > { %199 = sbr.rel (%p1817_p4) target bundleno = 21 (0x15), region = 36  ;;  %vm200_vm0 = vcmask (!%p1817_p4), 15360   ;;  %v1998_v0 = vmov (!%p1817_p4), 0.0  }
   0xf   : > { %s1968_s18 = smul.u32 12, %s187_s17  ;;  %201 = vst.msk [vmem:[%s2225_s4] sm:$0xff] (!%p1817_p4), %vm200_vm0, %v1998_v0 }
  0x10   : > { %s1969_s19 = smul.u32 24, %s187_s17 }
  0x11   : > { %s2045_s22 = scalar_lea.vmem %s2221_s0, %s1968_s18 }
  0x12   : > { %s2050_s25 = scalar_lea.vmem %s2224_s3, %s1969_s19 }
  0x15 PF: > { %v2056_v1 = vld [vmem:[%s2045_s22] sm:$0xff]  ;;  %s1999_s28 = smov 127   ;;  %v2000_v3 = vmov 0.0   ;;  %v203_v4 = vld [vmem:[%s2045_s22 + $0x8] sm:$0xf]  ;;  %s2001_s29 = smov 126   ;;  %v1710_v61 = vlaneseq }
  0x16   : > { %210 = vrot.lane.b32.xlu1 %v2056_v1, %s1999_s28  ;;  %v209_v2 = vcombine.high %v2056_v1, %v2056_v1  ;;  %1891 = vmatprep.subr.mxu1 %v2000_v3  ;;  %vm2002_vm1 = vmmov 0   ;;  %v522_v5 = vld [vmem:[%s2045_s22 + $0x8] sm:$0xf]  ;;  %s2003_s30 = smov 110   ;;  %s2004_s5 = smov 109   ;;  %vm223_vm2 = vcmask 1043456  }
  0x17   : > { %294 = vmatprep.mubr.f32.mxu0 %v2000_v3  ;;  %1893 = vmatprep.mubr.msk.f32.mxu1 %vm2002_vm1, %v2000_v3  ;;  %v691_v6 = vld [vmem:[%s2045_s22 + $0x8] sm:$0xf]  ;;  %s2005_s6 = smov 108   ;;  %s2006_s7 = smov 92   ;;  %vm216_vm3 = vcmask 1039360   ;;  %vm219_vm4 = vcmask 31744  }
  0x18   : > { %212 = vrot.lane.b32.xlu0 %v209_v2, %s1999_s28  ;;  %v860_v7 = vld [vmem:[%s2045_s22 + $0x8] sm:$0xf]  ;;  %s2007_s8 = smov 91   ;;  %s2008_s9 = smov 90   ;;  %vm534_vm5 = vcmask 1031168   ;;  %v204_v22 = vld [vmem:[%s2222_s1] sm:$0xff] }
  0x19   : > { %v1029_v8 = vld [vmem:[%s2045_s22 + $0x8] sm:$0xf]  ;;  %vm703_vm6 = vcmask 900096   ;;  %v1829_v29 = vld [vmem:[%s2222_s1 + $0x10] sm:$0xff]  ;;  %vm872_vm7 = vcmask 891904   ;;  %v1835_v35 = vld [vmem:[%s2222_s1 + $0x18] sm:$0xff] }
  0x1a   : > { %530 = vrot.lane.b32.xlu1 %v209_v2, %s2001_s29  ;;  %v1198_v9 = vld [vmem:[%s2045_s22 + $0x8] sm:$0xf]  ;;  %vm1041_vm8 = vcmask 883712   ;;  %v1841_v41 = vld [vmem:[%s2222_s1 + $0x20] sm:$0xff]  ;;  %vm1210_vm9 = vcmask 752640   ;;  %vm1379_vm10 = vcmask 744448  }
  0x1b   : > { %v1367_v10 = vld [vmem:[%s2045_s22 + $0x8] sm:$0xf]  ;;  %v1853_v52 = vld [vmem:[%s2222_s1 + $0x30] sm:$0xff]  ;;  %vm1548_vm11 = vcmask 736256   ;;  %v1859_v58 = vld [vmem:[%s2222_s1 + $0x38] sm:$0xff]  ;;  %v1711_v62 = vshrl.u32 %v1710_v61, 7 }
  0x1c   : > { %214 = vrot.lane.b32.xlu0 %v203_v4, %s1999_s28  ;;  %v1536_v11 = vld [vmem:[%s2045_s22 + $0x8] sm:$0xf]  ;;  %v1865_v60 = vld [vmem:[%s2222_s1 + $0x40] sm:$0xff]  ;;  %vm1706_vm12 = vcmask 261120   ;;  %vm1735_vm13 = vcmask 7168   ;;  %vm1747_vm14 = vcmask 15368  }
  0x1d   : > { %v1818_v15 = vld [vmem:[%s2222_s1 + $0x8] sm:$0xff]  ;;  %v1720_v63 = vsub.s32 2, %v1711_v62  ;;  %v1708_v0 = vld [vmem:[%s2223_s2] sm:$0x7] }
  0x1e   : > { %528 = vrot.lane.b32.xlu1 %v2056_v1, %s2001_s29  ;;  %v1847_v47 = vld [vmem:[%s2222_s1 + $0x28] sm:$0xff] }
  0x20   : > { %532 = vrot.lane.b32.xlu0 %v522_v5, %s2001_s29 }
  0x22   : > { %701 = vrot.lane.b32.xlu1 %v691_v6, %s2003_s30 }
  0x24   : > { %699 = vrot.lane.b32.xlu0 %v209_v2, %s2003_s30 }
  0x26   : > { %868 = vrot.lane.b32.xlu1 %v209_v2, %s2004_s5 }
  0x28   : > { %697 = vrot.lane.b32.xlu0 %v2056_v1, %s2003_s30 }
  0x2a   : > { %866 = vrot.lane.b32.xlu1 %v2056_v1, %s2004_s5 }
  0x2c   : > { %870 = vrot.lane.b32.xlu0 %v860_v7, %s2004_s5 }
  0x2e   : > { %1039 = vrot.lane.b32.xlu1 %v1029_v8, %s2005_s6 }
  0x30   : > { %1037 = vrot.lane.b32.xlu0 %v209_v2, %s2005_s6 }
  0x32   : > { %1206 = vrot.lane.b32.xlu1 %v209_v2, %s2006_s7 }
  0x34   : > { %1035 = vrot.lane.b32.xlu0 %v2056_v1, %s2005_s6 }
  0x36   : > { %1204 = vrot.lane.b32.xlu1 %v2056_v1, %s2006_s7 }
  0x38   : > { %1208 = vrot.lane.b32.xlu0 %v1198_v9, %s2006_s7 }
  0x3a   : > { %1377 = vrot.lane.b32.xlu1 %v1367_v10, %s2007_s8 }
  0x3c   : > { %1375 = vrot.lane.b32.xlu0 %v209_v2, %s2007_s8 }
  0x3e   : > { %1544 = vrot.lane.b32.xlu1 %v209_v2, %s2008_s9 }
  0x40   : > { %1373 = vrot.lane.b32.xlu0 %v2056_v1, %s2007_s8 }
  0x42   : > { %1542 = vrot.lane.b32.xlu1 %v2056_v1, %s2008_s9 }
  0x44   : > { %1546 = vrot.lane.b32.xlu0 %v1536_v11, %s2008_s9 }
  0x88   : > { %v211_v12 = vpop.permute.xlu1 %210 }
  0x8a   : > { %v213_v13 = vpop.permute.xlu0 %212 }
  0x8b   : > { %v217_v18 = vsel %vm216_vm3, %v211_v12, %v213_v13 }
  0x8c   : > { %v531_v14 = vpop.permute.xlu1 %530 }
  0x8e   : > { %v215_v16 = vpop.permute.xlu0 %214 }
  0x8f   : > { %1892 = vmatpush3.msk.msra.mxu1 %vm223_vm2, %v215_v16  ;;  %v218_v17 = vsel %vm216_vm3, %v213_v13, %v215_v16 }
  0x90   : > { %1819 = vmatprep.subr.msk.mxu0 %vm223_vm2, %v218_v17  ;;  %1894 = vmatmul.mubr.msk.f32.vlgmr.msra.gmra.mrb[0].mxu1 %vm219_vm4, %v1818_v15  ;;  %v529_v19 = vpop.permute.xlu1 %528 }
  0x91   : > { %1820 = vmatpush1.msk.msra.mxu0 %vm223_vm2, %v217_v18  ;;  %1896 = vmatprep.subr.mxu1 %v2000_v3  ;;  %v535_v25 = vsel %vm534_vm5, %v529_v19, %v531_v14 }
  0x92   : > { %1821 = vmatmul.mubr.msk.f32.vlgmr.msra.gmra.mrb[0].mxu0 %vm219_vm4, %v1818_v15  ;;  %1824 = vmatprep.subr.msk.mxu0 %vm223_vm2, %v209_v2  ;;  %v533_v20 = vpop.permute.xlu0 %532  ;;  %v1716_v2 = vsub.s32 1, %v1711_v62 }
  0x93   : > { %1825 = vmatpush1.msk.msra.mxu0 %vm223_vm2, %v2056_v1  ;;  %1897 = vmatpush3.msk.msra.mxu1 %vm223_vm2, %v203_v4  ;;  %v536_v21 = vsel %vm534_vm5, %v531_v14, %v533_v20  ;;  %v1712_v1 = vsub.s32 0, %v1711_v62 }
  0x94   : > { %1898 = vmatprep.mubr.msk.f32.mxu1 %vm2002_vm1, %v2000_v3  ;;  %1830 = vmatprep.subr.msk.mxu0 %vm223_vm2, %v536_v21  ;;  %v702_v24 = vpop.permute.xlu1 %701  ;;  %v1717_v6 = vrot.slane %v1708_v0, %v1716_v2 }
  0x95   : > { %1901 = vmatprep.subr.mxu1 %v2000_v3  ;;  %444 = vmatprep.mubr.f32.mxu0 %v2000_v3  ;;  %v1713_v4 = vrot.slane %v1708_v0, %v1712_v1 }
  0x96   : > { %v700_v23 = vpop.permute.xlu0 %699 }
  0x97   : > { %v705_v26 = vsel %vm703_vm6, %v700_v23, %v702_v24 }
  0x98   : > { %1899 = vmatmul.mubr.msk.f32.vlgmr.msra.gmra.mrb[0].mxu1 %vm219_vm4, %v204_v22  ;;  %v869_v28 = vpop.permute.xlu1 %868 }
  0x99   : > { %1902 = vmatpush3.msk.msra.mxu1 %vm223_vm2, %v533_v20  ;;  %1903 = vmatprep.mubr.msk.f32.mxu1 %vm2002_vm1, %v2000_v3 }
  0x9a   : > { %1826 = vmatmul.mubr.msk.f32.vlgmr.msra.gmra.mrb[0].mxu0 %vm219_vm4, %v204_v22  ;;  %v698_v27 = vpop.permute.xlu0 %697  ;;  %1906 = vmatprep.subr.mxu1 %v2000_v3  ;;  %v1728_v22 = vld [vmem:[%s2225_s4] sm:$0xff] }
  0x9b   : > { %1831 = vmatpush1.msk.msra.mxu0 %vm223_vm2, %v535_v25  ;;  %610 = vmatprep.mubr.f32.mxu0 %v2000_v3  ;;  %v704_v31 = vsel %vm703_vm6, %v698_v27, %v700_v23 }
  0x9c   : > { %1836 = vmatprep.subr.msk.mxu0 %vm223_vm2, %v705_v26  ;;  %v867_v33 = vpop.permute.xlu1 %866 }
  0x9d   : > { %v873_v37 = vsel %vm872_vm7, %v867_v33, %v869_v28 }
  0x9e   : > { %v871_v30 = vpop.permute.xlu0 %870 }
  0x9f   : > { %v874_v32 = vsel %vm872_vm7, %v869_v28, %v871_v30 }
  0xa0   : > { %1904 = vmatmul.mubr.msk.f32.vlgmr.msra.gmra.mrb[0].mxu1 %vm219_vm4, %v1829_v29  ;;  %v1040_v36 = vpop.permute.xlu1 %1039 }
  0xa1   : > { %1907 = vmatpush3.msk.msra.mxu1 %vm223_vm2, %v702_v24  ;;  %1908 = vmatprep.mubr.msk.f32.mxu1 %vm2002_vm1, %v2000_v3 }
  0xa2   : > { %1832 = vmatmul.mubr.msk.f32.vlgmr.msra.gmra.mrb[0].mxu0 %vm219_vm4, %v1829_v29  ;;  %1911 = vmatprep.subr.mxu1 %v2000_v3  ;;  %v1038_v34 = vpop.permute.xlu0 %1037 }
  0xa3   : > { %1837 = vmatpush1.msk.msra.mxu0 %vm223_vm2, %v704_v31  ;;  %779 = vmatprep.mubr.f32.mxu0 %v2000_v3  ;;  %v1043_v38 = vsel %vm1041_vm8, %v1038_v34, %v1040_v36 }
  0xa4   : > { %1842 = vmatprep.subr.msk.mxu0 %vm223_vm2, %v874_v32  ;;  %v1207_v40 = vpop.permute.xlu1 %1206 }
  0xa6   : > { %v1036_v39 = vpop.permute.xlu0 %1035 }
  0xa7   : > { %v1042_v43 = vsel %vm1041_vm8, %v1036_v39, %v1038_v34 }
  0xa8   : > { %1909 = vmatmul.mubr.msk.f32.vlgmr.msra.gmra.mrb[0].mxu1 %vm219_vm4, %v1835_v35  ;;  %v1205_v45 = vpop.permute.xlu1 %1204 }
  0xa9   : > { %1912 = vmatpush3.msk.msra.mxu1 %vm223_vm2, %v871_v30  ;;  %1913 = vmatprep.mubr.msk.f32.mxu1 %vm2002_vm1, %v2000_v3  ;;  %v1211_v49 = vsel %vm1210_vm9, %v1205_v45, %v1207_v40 }
  0xaa   : > { %1838 = vmatmul.mubr.msk.f32.vlgmr.msra.gmra.mrb[0].mxu0 %vm219_vm4, %v1835_v35  ;;  %1916 = vmatprep.subr.mxu1 %v2000_v3  ;;  %v1209_v42 = vpop.permute.xlu0 %1208 }
  0xab   : > { %1843 = vmatpush1.msk.msra.mxu0 %vm223_vm2, %v873_v37  ;;  %948 = vmatprep.mubr.f32.mxu0 %v2000_v3  ;;  %v1212_v44 = vsel %vm1210_vm9, %v1207_v40, %v1209_v42 }
  0xac   : > { %1848 = vmatprep.subr.msk.mxu0 %vm223_vm2, %v1043_v38  ;;  %v1378_v48 = vpop.permute.xlu1 %1377 }
  0xae   : > { %v1376_v46 = vpop.permute.xlu0 %1375 }
  0xaf   : > { %v1381_v50 = vsel %vm1379_vm10, %v1376_v46, %v1378_v48 }
  0xb0   : > { %1914 = vmatmul.mubr.msk.f32.vlgmr.msra.gmra.mrb[0].mxu1 %vm219_vm4, %v1841_v41  ;;  %v1545_v54 = vpop.permute.xlu1 %1544 }
  0xb1   : > { %1917 = vmatpush3.msk.msra.mxu1 %vm223_vm2, %v1040_v36  ;;  %1918 = vmatprep.mubr.msk.f32.mxu1 %vm2002_vm1, %v2000_v3 }
  0xb2   : > { %1844 = vmatmul.mubr.msk.f32.vlgmr.msra.gmra.mrb[0].mxu0 %vm219_vm4, %v1841_v41  ;;  %1921 = vmatprep.subr.mxu1 %v2000_v3  ;;  %v1374_v51 = vpop.permute.xlu0 %1373 }
  0xb3   : > { %1849 = vmatpush1.msk.msra.mxu0 %vm223_vm2, %v1042_v43  ;;  %1117 = vmatprep.mubr.f32.mxu0 %v2000_v3  ;;  %v1380_v55 = vsel %vm1379_vm10, %v1374_v51, %v1376_v46 }
  0xb4   : > { %1854 = vmatprep.subr.msk.mxu0 %vm223_vm2, %v1212_v44  ;;  %v1543_v57 = vpop.permute.xlu1 %1542 }
  0xb5   : > { %v1549_v59 = vsel %vm1548_vm11, %v1543_v57, %v1545_v54 }
  0xb6   : > { %v1547_v53 = vpop.permute.xlu0 %1546 }
  0xb7   : > { %v1550_v56 = vsel %vm1548_vm11, %v1545_v54, %v1547_v53 }
  0xb8   : > { %1919 = vmatmul.mubr.msk.f32.vlgmr.msra.gmra.mrb[0].mxu1 %vm219_vm4, %v1847_v47 }
  0xb9   : > { %1922 = vmatpush3.msk.msra.mxu1 %vm223_vm2, %v1209_v42  ;;  %1923 = vmatprep.mubr.msk.f32.mxu1 %vm2002_vm1, %v2000_v3 }
  0xba   : > { %1850 = vmatmul.mubr.msk.f32.vlgmr.msra.gmra.mrb[0].mxu0 %vm219_vm4, %v1847_v47  ;;  %1926 = vmatprep.subr.mxu1 %v2000_v3 }
  0xbb   : > { %1855 = vmatpush1.msk.msra.mxu0 %vm223_vm2, %v1211_v49  ;;  %1286 = vmatprep.mubr.f32.mxu0 %v2000_v3 }
  0xbc   : > { %1860 = vmatprep.subr.msk.mxu0 %vm223_vm2, %v1381_v50 }
  0xc0   : > { %1924 = vmatmul.mubr.msk.f32.vlgmr.msra.gmra.mrb[0].mxu1 %vm219_vm4, %v1853_v52 }
  0xc1   : > { %1927 = vmatpush3.msk.msra.mxu1 %vm223_vm2, %v1378_v48  ;;  %1928 = vmatprep.mubr.msk.f32.mxu1 %vm2002_vm1, %v2000_v3 }
  0xc2   : > { %1856 = vmatmul.mubr.msk.f32.vlgmr.msra.gmra.mrb[0].mxu0 %vm219_vm4, %v1853_v52  ;;  %1931 = vmatprep.subr.mxu1 %v2000_v3 }
  0xc3   : > { %1861 = vmatpush1.msk.msra.mxu0 %vm223_vm2, %v1380_v55  ;;  %1455 = vmatprep.mubr.f32.mxu0 %v2000_v3 }
  0xc4   : > { %1866 = vmatprep.subr.msk.mxu0 %vm223_vm2, %v1550_v56 }
  0xc8   : > { %1929 = vmatmul.mubr.msk.f32.vlgmr.msra.gmra.mrb[0].mxu1 %vm219_vm4, %v1859_v58 }
  0xc9   : > { %1932 = vmatpush3.msk.msra.mxu1 %vm223_vm2, %v1547_v53  ;;  %1933 = vmatprep.mubr.msk.f32.mxu1 %vm2002_vm1, %v2000_v3 }
  0xca   : > { %1862 = vmatmul.mubr.msk.f32.vlgmr.msra.gmra.mrb[0].mxu0 %vm219_vm4, %v1859_v58 }
  0xcb   : > { %1867 = vmatpush1.msk.msra.mxu0 %vm223_vm2, %v1549_v59  ;;  %1624 = vmatprep.mubr.f32.mxu0 %v2000_v3  ;;  %v1721_v3 = vrot.slane %v1708_v0, %v1720_v63 }
  0xd0   : > { %1934 = vmatmul.mubr.msk.f32.vlgmr.msra.gmra.mrb[0].mxu1 %vm219_vm4, %v1865_v60 }
  0xd2   : > { %1868 = vmatmul.mubr.msk.f32.vlgmr.msra.gmra.mrb[0].mxu0 %vm219_vm4, %v1865_v60 }
 0x1a3   : > { %v1697_v5 = vpop.f32.mrb[0].mxu1 }
 0x1a4   : > { %1707 = vst.msk [vmem:[%s2050_s25 + $0x10] sm:$0xff] %vm1706_vm12, %v1697_v5  ;;  %v1727_v7 = vmul.f32 %v1721_v3, %v1697_v5  ;;  %v1935_v8 = vpop.f32.mrb[1].mxu1 }
 0x1a5   : > { %v1626_v9 = vpop.f32.mrb[0].mxu0 }
 0x1a6   : > { %1704 = vst [vmem:[%s2050_s25] sm:$0xff] %v1626_v9  ;;  %v1725_v10 = vmul.f32 %v1713_v4, %v1626_v9  ;;  %v1628_v11 = vpop.f32.mrb[1].mxu0  ;;  %v1740_v13 = vmul.f32 %v1727_v7, %v1697_v5  ;;  %v1730_v17 = vsel %vm1706_vm12, %v1727_v7, 0.0 }
 0x1a7   : > { %1705 = vst [vmem:[%s2050_s25 + $0x8] sm:$0xff] %v1628_v11  ;;  %v1726_v12 = vmul.f32 %v1717_v6, %v1628_v11 }
 0x1a8   : > { %v1738_v14 = vmul.f32 %v1725_v10, %v1626_v9  ;;  %v1742_v20 = vsel %vm1706_vm12, %v1740_v13, 0.0 }
 0x1a9   : > { %v1739_v15 = vmul.f32 %v1726_v12, %v1628_v11  ;;  %v1729_v16 = vadd.f32 %v1726_v12, %v1725_v10 }
 0x1ab   : > { %v1731_v18 = vadd.f32 %v1730_v17, %v1729_v16  ;;  %v1741_v19 = vadd.f32 %v1739_v15, %v1738_v14 }
 0x1ad   : > { %1732 = vadd.xlane.f32.xlu0 %v1731_v18  ;;  %v1743_v21 = vadd.f32 %v1742_v20, %v1741_v19 }
 0x1af   : > { %1744 = vadd.xlane.f32.xlu1 %v1743_v21 }
 0x23a   : > { %v1733_v23 = vpop.xlane.xlu0 %1732 }
 0x23b   : > { %v1734_v24 = vadd.f32 %v1733_v23, %v1728_v22 }
 0x23c   : > { %v1745_v25 = vpop.xlane.xlu1 %1744 }
 0x23d   : > { %1736 = vst.msk [vmem:[%s2225_s4] sm:$0xff] %vm1735_vm13, %v1734_v24 }
 0x244   : > { %v1737_v26 = vld [vmem:[%s2225_s4] sm:$0xff] }
 0x245   : > { %v1746_v27 = vadd.f32 %v1745_v25, %v1737_v26 }
 0x247   : > { %1748 = vst.msk [vmem:[%s2225_s4] sm:$0xff] %vm1747_vm14, %v1746_v27 }
 0x248 PF: > { %s15_s15 = sadd.s32 1, %s1996_s15  }
 0x249   : > { %p12_p5 = scmp.ge.s32.totalorder %s15_s15, 4  }
 0x24b   :  { %14 = sbr.rel (!%p12_p5) target bundleno = 1 (0x1), region = 82 }

</bundles_post_ra>
